<compile_context>
chip_gen: v7x
topology: tpu7x:2x2x1
jax: 0.10.0
libtpu: 0.0.40
codegen_flags: <defaults>
</compile_context>

<pallas_src>
import functools

import jax
import jax.numpy as jnp
from jax.experimental import pallas as pl
from jax.experimental.pallas import tpu as pltpu


def _round_up(n, m):
    return (n + m - 1) // m * m


def _qnet_kernel(x_ref, w1_ref, b1_ref, w2_ref, b2_ref, o_ref):
    # Hidden layer: (B, In)bf16 @ (In, Hp)bf16 -> (B, Hp)f32 on the MXU.
    x = x_ref[...].astype(jnp.bfloat16)
    h = jnp.dot(x, w1_ref[...], preferred_element_type=jnp.float32)
    h = jnp.maximum(h + b1_ref[...], 0.0)          # bias + ReLU in f32 (VPU)
    # Output layer: (B, Hp)bf16 @ (Hp, Op)bf16 -> (B, Op)f32.
    out = jnp.dot(h.astype(jnp.bfloat16), w2_ref[...],
                  preferred_element_type=jnp.float32)
    o_ref[...] = (out + b2_ref[...]).astype(o_ref.dtype)


def prepare_params(w1, b1, w2, b2, compute_dtype=jnp.bfloat16):
    """One-time parameter prep: transpose, zero-pad to lane-dense widths, cast to bf16.

    w1: (H, In), b1: (H,), w2: (Out, H), b2: (Out,)  (PyTorch nn.Linear layout)
    Returns kernel-ready (w1_t, b1_r, w2_t, b2_r) plus the true output size.
    """
    H, In = w1.shape
    Out, _ = w2.shape
    Hp = _round_up(H, 128)    # lane-dense hidden width
    Op = _round_up(Out, 128)  # lane-dense output width

    w1_t = jnp.zeros((In, Hp), compute_dtype).at[:, :H].set(
        w1.T.astype(compute_dtype))
    b1_r = jnp.zeros((1, Hp), jnp.float32).at[:, :H].set(
        b1.astype(jnp.float32))
    w2_t = jnp.zeros((Hp, Op), compute_dtype).at[:H, :Out].set(
        w2.T.astype(compute_dtype))
    b2_r = jnp.zeros((1, Op), jnp.float32).at[:, :Out].set(
        b2.astype(jnp.float32))
    return w1_t, b1_r, w2_t, b2_r, Out


@functools.partial(jax.jit, static_argnames=("out_size",))
def linear_qnet_forward(x, w1_t, b1_r, w2_t, b2_r, *, out_size):
    """x: (B, In) f32.  Params must come from `prepare_params`."""
    B = x.shape[0]
    Op = w2_t.shape[1]
    vmem = pl.BlockSpec(memory_space=pltpu.MemorySpace.VMEM)
    out_padded = pl.pallas_call(
        _qnet_kernel,
        out_shape=jax.ShapeDtypeStruct((B, Op), jnp.float32),
        in_specs=[vmem, vmem, vmem, vmem, vmem],
        out_specs=vmem,
    )(x, w1_t, b1_r, w2_t, b2_r)
    # Padded lanes are exactly zero (zero weights/biases); slice fuses under jit.
    return out_padded[:, :out_size]


def init_params(key, input_size, hidden_size, output_size, dtype=jnp.float32):
    """Deterministic init mimicking nn.Linear's U(-1/sqrt(fan_in), 1/sqrt(fan_in))."""
    k1, k2, k3, k4 = jax.random.split(key, 4)
    bound1 = 1.0 / (input_size ** 0.5)
    bound2 = 1.0 / (hidden_size ** 0.5)
    w1 = jax.random.uniform(k1, (hidden_size, input_size), dtype, -bound1, bound1)
    b1 = jax.random.uniform(k2, (hidden_size,), dtype, -bound1, bound1)
    w2 = jax.random.uniform(k3, (output_size, hidden_size), dtype, -bound2, bound2)
    b2 = jax.random.uniform(k4, (output_size,), dtype, -bound2, bound2)
    return w1, b1, w2, b2


# TODO(synk): Linear_QNet.save() is host-side checkpoint I/O, not part of the forward
# pass; no Pallas equivalent needed.


if __name__ == "__main__":
    # Snake-AI-like sizes: 11 state features -> 32 hidden -> 3 actions, batch of 8.
    batch, input_size, hidden_size, output_size = 8, 11, 32, 3

    key = jax.random.PRNGKey(0)
    kx, kp = jax.random.split(key)
    x = jax.random.normal(kx, (batch, input_size), jnp.float32)
    w1, b1, w2, b2 = init_params(kp, input_size, hidden_size, output_size)

    # One-time parameter prep (transpose / pad / bf16 cast) — hoisted out of the
    # per-call hot path.
    w1_t, b1_r, w2_t, b2_r, out_size = prepare_params(w1, b1, w2, b2)

    out = linear_qnet_forward(x, w1_t, b1_r, w2_t, b2_r, out_size=out_size)
    out = jax.block_until_ready(out)

    # Pure-JAX f32 reference (same math as the PyTorch forward).  Tolerance loosened
    # because the MXU operands are bf16 (f32 accumulation).
    ref = jnp.maximum(x @ w1.T + b1, 0.0) @ w2.T + b2
    assert out.shape == (batch, output_size)
    assert jnp.allclose(out, ref, atol=2e-2, rtol=2e-2), "mismatch vs reference"

    print("KERNEL_OK")
</pallas_src>

<mosaic_0001>
module attributes {stable_mosaic.version = 11 : i64} {
  func.func @_qnet_kernel(%arg0: memref<8x11xf32, #tpu.memory_space<vmem>>, %arg1: memref<11x128xbf16, #tpu.memory_space<vmem>>, %arg2: memref<1x128xf32, #tpu.memory_space<vmem>>, %arg3: memref<128x128xbf16, #tpu.memory_space<vmem>>, %arg4: memref<1x128xf32, #tpu.memory_space<vmem>>, %arg5: memref<8x128xf32, #tpu.memory_space<vmem>>) attributes {dimension_semantics = [], scalar_prefetch = 0 : i64, scratch_operands = 0 : i64, tpu.core_type = #tpu.core_type<tc>} {
    %c0 = arith.constant 0 : index
    %c0_0 = arith.constant 0 : index
    %0 = vector.load %arg0[%c0, %c0_0] : memref<8x11xf32, #tpu.memory_space<vmem>>, vector<8x11xf32>
    %1 = arith.truncf %0 : vector<8x11xf32> to vector<8x11xbf16>
    %c0_1 = arith.constant 0 : index
    %c0_2 = arith.constant 0 : index
    %2 = vector.load %arg1[%c0_1, %c0_2] : memref<11x128xbf16, #tpu.memory_space<vmem>>, vector<11x128xbf16>
    %cst = arith.constant dense<0.000000e+00> : vector<8x128xf32>
    %3 = tpu.matmul %1, %2, %cst {dimension_numbers = #tpu.dot_dimension_numbers<[1], [0], [0], [1], [0, 0, 1, 1], [], []>} : vector<8x11xbf16>, vector<11x128xbf16>, vector<8x128xf32> -> vector<8x128xf32>
    %c0_3 = arith.constant 0 : index
    %c0_4 = arith.constant 0 : index
    %4 = vector.load %arg2[%c0_3, %c0_4] : memref<1x128xf32, #tpu.memory_space<vmem>>, vector<1x128xf32>
    %5 = vector.broadcast %4 : vector<1x128xf32> to vector<8x128xf32>
    %6 = arith.addf %3, %5 : vector<8x128xf32>
    %cst_5 = arith.constant 0.000000e+00 : f32
    %7 = vector.broadcast %cst_5 : f32 to vector<8x128xf32>
    %8 = arith.maximumf %6, %7 : vector<8x128xf32>
    %9 = arith.truncf %8 : vector<8x128xf32> to vector<8x128xbf16>
    %c0_6 = arith.constant 0 : index
    %c0_7 = arith.constant 0 : index
    %10 = vector.load %arg3[%c0_6, %c0_7] : memref<128x128xbf16, #tpu.memory_space<vmem>>, vector<128x128xbf16>
    %cst_8 = arith.constant dense<0.000000e+00> : vector<8x128xf32>
    %11 = tpu.matmul %9, %10, %cst_8 {dimension_numbers = #tpu.dot_dimension_numbers<[1], [0], [0], [1], [0, 0, 1, 1], [], []>} : vector<8x128xbf16>, vector<128x128xbf16>, vector<8x128xf32> -> vector<8x128xf32>
    %c0_9 = arith.constant 0 : index
    %c0_10 = arith.constant 0 : index
    %12 = vector.load %arg4[%c0_9, %c0_10] : memref<1x128xf32, #tpu.memory_space<vmem>>, vector<1x128xf32>
    %13 = vector.broadcast %12 : vector<1x128xf32> to vector<8x128xf32>
    %14 = arith.addf %11, %13 : vector<8x128xf32>
    %c0_11 = arith.constant 0 : index
    %c0_12 = arith.constant 0 : index
    %15 = vector.load %arg5[%c0_11, %c0_12] : memref<8x128xf32, #tpu.memory_space<vmem>>, vector<8x128xf32>
    tpu.vector_store %arg5[%c0_11, %c0_12], %14 {strides = array<i32>} : memref<8x128xf32, #tpu.memory_space<vmem>>, vector<8x128xf32>,
    return
  }
}

</mosaic_0001>

<bundles_post_ra>
// kernel: linear_qnet_forward.1
= control target key start
LH: loop header
LB: loop body
LE: loop exit
PB: predicated region body
PF: predicated region fallthrough
CT: control target
= control target key end

     0   :  { %10 = vsyncpa [#allocation3], 0  ;;  %s472_s0 = inlined_call_operand.hbm [shape: f32[8,11], index: 0, kind: input, shape index: {}]   ;;  %s473_s1 = inlined_call_operand.hbm [shape: bf16[11,128], index: 1, kind: input, shape index: {}]   ;;  %s474_s2 = inlined_call_operand.vmem [shape: f32[1,128], index: 2, kind: input, shape index: {}]   ;;  %s475_s3 = inlined_call_operand.hbm [shape: bf16[128,128], index: 3, kind: input, shape index: {}]   ;;  %s476_s4 = inlined_call_operand.vmem [shape: f32[1,128], index: 4, kind: input, shape index: {}]   ;;  %s477_s5 = inlined_call_operand.vmem [shape: f32[8,128], index: 5, kind: output, shape index: {}]  }
   0x1   :  { %11 = vsyncpa [#allocation5], 0  ;;  %s383_s18 = smov [#allocation4]   ;;  %s313_s22 = scalar_lea.hbm %s473_s1, 128 }
   0x2   :  { %s27_s19 = sshll.u32 %s383_s18, 4  ;;  %p314_p0 = scmp.ne.s32.totalorder %s473_s1, %s313_s22  ;;  %s28_s19 = int_to_ptr.vmem [resolvable:$true] %s27_s19 }
   0x3   :  { %p317_p1 = scmp.lt.u32.totalorder %s313_s22, %s473_s1 }
   0x5   :  { %p319_p2 = pnand %p317_p1, %p314_p0 }
   0x7   :  { %322 = shalt.err (!%p319_p2)
}
   0x8   :  { %s323_s27 = scalar_lea.vmem %s28_s19, 128  ;;  %p328_p4 = scmp.lt.s32.totalorder %s28_s19, %s28_s19 }
   0x9   :  { %p324_p3 = scmp.ne.s32.totalorder %s28_s19, %s323_s27  ;;  %p329_p5 = scmp.lt.s32.totalorder %s323_s27, %s323_s27 }
   0xb   :  { %p330_p6 = por %p329_p5, %p328_p4 }
   0xd   :  { %p331_p7 = pnand %p330_p6, %p324_p3 }
   0xf   :  { %334 = shalt.err (!%p331_p7)
}
  0x10   :  { %s384_s28 = smov 64   ;;  %s385_s29 = smov 4  }
  0x11   :  { %33 = dma.hbm_to_vmem [thread:$0]  %s473_s1, 128, %s28_s19, [#allocation5], %s384_s28, %s384_s28, %s385_s29  }
  0x12   :  { %s386_s7 = smov [#allocation2]   ;;  %s387_s9 = smov [#allocation6]  }
  0x13   :  { %s18_s8 = sshll.u32 %s386_s7, 4  ;;  %s41_s10 = sshll.u32 %s387_s9, 4  ;;  %s19_s8 = int_to_ptr.vmem [resolvable:$true] %s18_s8  ;;  %s42_s10 = int_to_ptr.vmem [resolvable:$true] %s41_s10 }
  0x14   :  { %s335_s13 = scalar_lea.hbm %s472_s0, 128 }
  0x15   :  { %p336_p8 = scmp.ne.s32.totalorder %s472_s0, %s335_s13  ;;  %p339_p9 = scmp.lt.u32.totalorder %s335_s13, %s472_s0 }
  0x17   :  { %p341_p10 = pnand %p339_p9, %p336_p8 }
  0x19   :  { %344 = shalt.err (!%p341_p10)
}
  0x1a   :  { %s345_s1 = scalar_lea.vmem %s19_s8, 128  ;;  %p350_p12 = scmp.lt.s32.totalorder %s19_s8, %s19_s8 }
  0x1b   :  { %p346_p11 = scmp.ne.s32.totalorder %s19_s8, %s345_s1  ;;  %p351_p13 = scmp.lt.s32.totalorder %s345_s1, %s345_s1 }
  0x1d   :  { %p352_p0 = por %p351_p13, %p350_p12 }
  0x1f   :  { %p353_p1 = pnand %p352_p0, %p346_p11 }
  0x21   :  { %356 = shalt.err (!%p353_p1)
}
  0x22   :  { %21 = dma.hbm_to_vmem [thread:$0]  %s472_s0, 128, %s19_s8, [#allocation3]  }
  0x23   :  { %s357_s22 = scalar_lea.hbm %s475_s3, 1024 }
  0x24   :  { %p358_p2 = scmp.ne.s32.totalorder %s475_s3, %s357_s22  ;;  %p361_p3 = scmp.lt.u32.totalorder %s357_s22, %s475_s3 }
  0x26   :  { %p363_p4 = pnand %p361_p3, %p358_p2 }
  0x28   :  { %366 = shalt.err (!%p363_p4)
}
  0x29   :  { %s367_s27 = scalar_lea.vmem %s42_s10, 1024  ;;  %p372_p6 = scmp.lt.s32.totalorder %s42_s10, %s42_s10 }
  0x2a   :  { %p368_p5 = scmp.ne.s32.totalorder %s42_s10, %s367_s27  ;;  %p373_p7 = scmp.lt.s32.totalorder %s367_s27, %s367_s27 }
  0x2c   :  { %p374_p8 = por %p373_p7, %p372_p6 }
  0x2e   :  { %p375_p9 = pnand %p374_p8, %p368_p5 }
  0x30   :  { %378 = shalt.err (!%p375_p9)
}
  0x31   :  { %47 = dma.hbm_to_vmem [thread:$0]  %s475_s3, 1024, %s42_s10, [#allocation5], %s384_s28, %s384_s28, %s385_s29  }
  0x32   :  { %379 = dma.done.wait [#allocation3], 128  }
  0x33   :  { %380 = vsyncadd [#allocation3], 4294967168 }
  0x34   :  { %381 = dma.done.wait [#allocation5], 1152  }
  0x35   :  { %382 = vsyncadd [#allocation5], 4294966144  ;;  %vm80_vm0 = vcmask 1044480   ;;  %v388_v0 = vmov 0.0   ;;  %vm389_vm1 = vmmov 0   ;;  %vm81_vm2 = vcmask 1045504  }
  0x36   :  { %270 = vmatprep.subr.bf16.mxu0 %v388_v0  ;;  %276 = vmatprep.subr.bf16.mxu1 %v388_v0  ;;  %v390_v1 = vmov 65535   ;;  %v304_v4 = vld [vmem:[#allocation4] sm:$0x3f]   ;;  %v60_v5 = vld [vmem:[#allocation2] sm:$0xff]  ;;  %v305_v7 = vld [vmem:[#allocation6] sm:$0xff]   ;;  %vm76_vm3 = vcmask 89088  }
  0x37   :  { %272 = vmatprep.mubr.msk.bf16.mxu0 %vm389_vm1, %v388_v0  ;;  %292 = vmatprep.mubr.msk.bf16.mxu1 %vm389_vm1, %v388_v0  ;;  %v82_v2 = vsel %vm80_vm0, 4294967295, %v390_v1  ;;  %v61_v8 = vpack.c.bf16 %v60_v5, %v60_v5  ;;  %v306_v9 = vld [vmem:[#allocation6 + $0x8] sm:$0xff]   ;;  %v307_v10 = vld [vmem:[#allocation6 + $0x10] sm:$0xff]   ;;  %v308_v11 = vld [vmem:[#allocation6 + $0x18] sm:$0xff]  }
  0x38   :  { %v83_v3 = vsel %vm81_vm2, %v82_v2, 0  ;;  %277 = vmatpush3.bf16.msra.mxu1 %v305_v7  ;;  %v309_v12 = vld [vmem:[#allocation6 + $0x20] sm:$0xff]   ;;  %v310_v13 = vld [vmem:[#allocation6 + $0x28] sm:$0xff]   ;;  %v311_v14 = vld [vmem:[#allocation6 + $0x30] sm:$0xff]  }
  0x39   :  { %v85_v6 = vand.u32 %v304_v4, %v83_v3  ;;  %278 = vmatprep.subr.bf16.mxu1 %v388_v0  ;;  %v312_v15 = vld [vmem:[#allocation6 + $0x38] sm:$0xff]   ;;  %v247_v16 = vld [vmem:[%s474_s2] ss:$0 sm:$0xff] }
  0x3a   :  { %v250_v24 = vld [vmem:[%s476_s4] ss:$0 sm:$0xff] }
  0x3b   :  { %271 = vmatpush3.bf16.msra.mxu0 %v85_v6 }
  0x3c   :  { %279 = vmatpush3.bf16.msra.mxu1 %v306_v9 }
  0x3d   :  { %280 = vmatprep.subr.bf16.mxu1 %v388_v0 }
  0x3e   :  { %273 = vmatmul.mubr.msk.bf16.vlgmr.msra.gmra.mrb[0].mxu0 %vm76_vm3, %v61_v8 }
  0x40   :  { %281 = vmatpush3.bf16.msra.mxu1 %v307_v10 }
  0x41   :  { %282 = vmatprep.subr.bf16.mxu1 %v388_v0 }
  0x44   :  { %283 = vmatpush3.bf16.msra.mxu1 %v308_v11 }
  0x45   :  { %284 = vmatprep.subr.bf16.mxu1 %v388_v0 }
  0x48   :  { %285 = vmatpush3.bf16.msra.mxu1 %v309_v12 }
  0x49   :  { %286 = vmatprep.subr.bf16.mxu1 %v388_v0 }
  0x4c   :  { %287 = vmatpush3.bf16.msra.mxu1 %v310_v13 }
  0x4d   :  { %288 = vmatprep.subr.bf16.mxu1 %v388_v0 }
  0x50   :  { %289 = vmatpush3.bf16.msra.mxu1 %v311_v14 }
  0x51   :  { %290 = vmatprep.subr.bf16.mxu1 %v388_v0 }
  0x54   :  { %291 = vmatpush3.bf16.msra.mxu1 %v312_v15 }
 0x111   :  { %v121_v17 = vpop.f32.mrb[0].mxu0 }
 0x112   :  { %v122_v18 = vadd.f32 %v247_v16, %v121_v17  ;;  %v274_v19 = vpop.f32.mrb[1].mxu0 }
 0x113   :  { %v124_v20 = vpop.f32.mrb[2].mxu0 }
 0x114   :  { %v127_v21 = vmax.f32 %v122_v18, 0.0  ;;  %v275_v22 = vpop.f32.mrb[3].mxu0 }
 0x116   :  { %v128_v23 = vpack.c.bf16 %v127_v21, %v127_v21 }
 0x118   :  { %293 = vmatmul.mubr.bf16.vlgmr.msra.gmra.mrb[0].mxu1 %v128_v23 }
 0x1eb   :  { %v234_v25 = vpop.f32.mrb[0].mxu1 }
 0x1ec   :  { %v235_v26 = vadd.f32 %v250_v24, %v234_v25  ;;  %v294_v27 = vpop.f32.mrb[1].mxu1 }
 0x1ed   :  { %v237_v28 = vpop.f32.mrb[2].mxu1 }
 0x1ee   :  { %240 = vst [vmem:[%s477_s5] sm:$0xff] %v235_v26  ;;  %v295_v29 = vpop.f32.mrb[3].mxu1 }
 0x1ef   :  { %245 = vsyncpa [#allocation3], 1 }
 0x1f0   :  { %246 = vsyncpa [#allocation5], 1 }

</bundles_post_ra>
